<compile_context>
chip_gen: v7x
topology: tpu7x:2x2x1
jax: 0.10.0
libtpu: 0.0.40
codegen_flags: <defaults>
</compile_context>

<pallas_src>
import functools

import jax
import jax.numpy as jnp
from jax import lax
from jax.experimental import pallas as pl
from jax.experimental.pallas import tpu as pltpu


def _round_up(n, m):
    return (n + m - 1) // m * m


def _stacked_rnn_kernel(hs_ref, x0_ref, w_in_ref, w_h_ref, w_out_ref, b_ref,
                        y_ref, htraj_ref, work, h_carry):
    """Grid = (time_chunks, depth); depth is the fastest (innermost) axis.

    The inter-layer activation for the current chunk is carried in the
    resident output block `y_ref` (block index constant across depth); the
    per-layer hidden state is carried across time chunks in `h_carry`.
    """
    tc = pl.program_id(0)
    d = pl.program_id(1)
    Tc, Bp, Dp = work.shape  # static block dims

    # Weights in their native (bf16-friendly) dtype; f32 accumulation only.
    w_in = w_in_ref[0]                          # (Dp, Dp)
    w_h = w_h_ref[0]                            # (Dp, Dp)
    w_out = w_out_ref[0]                        # (Dp, Dp)
    b = b_ref[0].astype(jnp.float32)            # (1, Dp)

    # Layer 0 reads the kernel input chunk; deeper layers read the resident
    # y block written by the previous layer.
    @pl.when(d == 0)
    def _():
        y_ref[...] = x0_ref[...]

    # First time chunk: initialise this layer's hidden carry from the input
    # hidden stack.
    @pl.when(tc == 0)
    def _():
        h_carry[d] = hs_ref[0].astype(jnp.float32)

    x2d = y_ref[...].reshape(Tc * Bp, Dp)       # layer input, native dtype

    # Input contribution + bias for all steps of this chunk: ONE lane-dense
    # GEMM hoisted off the serial recurrence.
    xw = jnp.dot(x2d, w_in, preferred_element_type=jnp.float32) + b
    work[...] = xw.reshape(Tc, Bp, Dp)

    # Serial time recurrence: only h @ W_h and tanh stay on the critical
    # path.  work[t] (= xw_t) is overwritten in place with h_t once consumed.
    def step(t, h_prev):
        pre = work[t] + jnp.dot(h_prev.astype(w_h.dtype), w_h,
                                preferred_element_type=jnp.float32)
        h_new = jnp.tanh(pre)
        work[t] = h_new
        return h_new

    h_last = lax.fori_loop(0, Tc, step, h_carry[d], unroll=min(Tc, 8))
    h_carry[d] = h_last

    # Hidden-state trajectory of this layer/chunk (one big store).
    # TODO(synk): expose a bf16 htraj output option to halve HBM writeback.
    htraj_ref[0] = work[...].astype(htraj_ref.dtype)

    # Residual output projection for all steps: ONE batched GEMM.  The layer
    # input is re-read from y_ref (still valid) so nothing full-chunk stays
    # live across the unrolled loop.
    h_all = work[...].reshape(Tc * Bp, Dp).astype(w_out.dtype)
    y = (jnp.dot(h_all, w_out, preferred_element_type=jnp.float32)
         + y_ref[...].reshape(Tc * Bp, Dp).astype(jnp.float32))
    y_ref[...] = y.reshape(Tc, Bp, Dp).astype(y_ref.dtype)


def _stacked_rnn_layers(x, hidden_stack, w_in_all, w_h_all, w_out_all, b_all):
    """x: (N, L, D), hidden_stack: (N, DEPTH, D) ->
       (y: (N, L, D), h_traj: (N, DEPTH, L, D))."""
    N, L, D = x.shape
    depth = hidden_stack.shape[1]
    out_dtype = x.dtype
    itemsize = jnp.dtype(out_dtype).itemsize

    # Lane/sublane-dense padded working shapes.  Sublane granularity follows
    # the dtype (8 rows f32, 16 bf16, 32 int8); lanes padded to 128.
    sublane = 8 * max(1, 4 // itemsize)
    Bp = _round_up(max(N, 1), sublane)
    Dp = _round_up(D, 128)

    # Time chunk: VMEM footprint is O(Tc), not O(L).
    Tc = min(L, 128)
    Lp = _round_up(L, Tc)
    n_chunks = Lp // Tc

    xp = jnp.zeros((Bp, Lp, Dp), x.dtype).at[:N, :L, :D].set(x)
    hp = jnp.zeros((depth, Bp, Dp), hidden_stack.dtype).at[:, :N, :D].set(
        jnp.transpose(hidden_stack, (1, 0, 2)))
    w_in_p = jnp.zeros((depth, Dp, Dp), w_in_all.dtype).at[:, :D, :D].set(w_in_all)
    w_h_p = jnp.zeros((depth, Dp, Dp), w_h_all.dtype).at[:, :D, :D].set(w_h_all)
    w_out_p = jnp.zeros((depth, Dp, Dp), w_out_all.dtype).at[:, :D, :D].set(w_out_all)
    b_p = jnp.zeros((depth, 1, Dp), b_all.dtype).at[:, :, :D].set(b_all)

    # One transpose to time-major for the whole stack (not per layer).
    x_tm = jnp.transpose(xp, (1, 0, 2))                   # (Lp, Bp, Dp)

    # Scoped-VMEM budget from actual block + scratch + double-buffer sizes.
    blk = Tc * Bp * Dp
    wblk = Dp * Dp
    vmem_bytes = (
        2 * blk * itemsize            # x chunk input (double-buffered)
        + 2 * Bp * Dp * itemsize      # h0 input
        + 3 * 2 * wblk * itemsize     # W_in / W_h / W_out
        + 2 * 8 * Dp * 4              # bias tile (sublane padded), generous
        + 2 * blk * itemsize          # y output
        + 2 * blk * itemsize          # h-trajectory output chunk
        + blk * 4                     # merged xw/h scratch (f32)
        + depth * Bp * Dp * 4         # per-layer hidden carry (f32)
    )
    vmem_limit = min(int(vmem_bytes * 1.5) + (2 << 20), 64 * 1024 * 1024)

    chunk_spec = pl.BlockSpec((Tc, Bp, Dp), lambda tc, d: (tc, 0, 0))
    wt_spec = pl.BlockSpec((1, Dp, Dp), lambda tc, d: (d, 0, 0))

    y_tm, htraj = pl.pallas_call(
        _stacked_rnn_kernel,
        out_shape=(jax.ShapeDtypeStruct((Lp, Bp, Dp), out_dtype),
                   jax.ShapeDtypeStruct((depth, Lp, Bp, Dp), out_dtype)),
        grid_spec=pltpu.PrefetchScalarGridSpec(
            num_scalar_prefetch=0,
            grid=(n_chunks, depth),
            in_specs=[
                pl.BlockSpec((1, Bp, Dp), lambda tc, d: (d, 0, 0)),   # h0 / layer
                chunk_spec,                                           # x chunk
                wt_spec,                                              # W_in
                wt_spec,                                              # W_h
                wt_spec,                                              # W_out
                pl.BlockSpec((1, 1, Dp), lambda tc, d: (d, 0, 0)),    # b
            ],
            out_specs=[
                chunk_spec,                                           # y (resident across depth)
                pl.BlockSpec((1, Tc, Bp, Dp),
                             lambda tc, d: (d, tc, 0, 0)),            # h trajectory
            ],
            scratch_shapes=[
                pltpu.VMEM((Tc, Bp, Dp), jnp.float32),   # merged xw / h buffer
                pltpu.VMEM((depth, Bp, Dp), jnp.float32),  # per-layer hidden carry
            ],
        ),
        compiler_params=pltpu.CompilerParams(
            # Both axes are true serial dependencies (hidden carry over time
            # chunks, resident activation over depth).
            dimension_semantics=("arbitrary", "arbitrary"),
            vmem_limit_bytes=vmem_limit),
    )(hp, x_tm, w_in_p, w_h_p, w_out_p, b_p)

    y = jnp.transpose(y_tm, (1, 0, 2))[:N, :L, :D]                  # (N, L, D)
    h_out = jnp.transpose(htraj, (2, 0, 1, 3))[:N, :, :L, :D]       # (N, depth, L, D)
    return y, h_out


def stacked_hidden_state_forward(x, hidden_stack, layer_params):
    """Exact port of StackedHiddenState.forward semantics."""
    w_in_all = jnp.stack([p[0] for p in layer_params])
    w_h_all = jnp.stack([p[1] for p in layer_params])
    w_out_all = jnp.stack([p[2] for p in layer_params])
    b_all = jnp.stack([p[3] for p in layer_params])

    no_batch = hidden_stack.ndim < 3
    if no_batch:
        x = x[None]
        hidden_stack = hidden_stack[None]
    no_len = x.ndim < 3
    if no_len:
        x = x[:, None]

    batch_shape = x.shape[:-2]
    x = x.reshape((-1,) + x.shape[len(batch_shape):])
    hidden_stack = hidden_stack.reshape((-1,) + hidden_stack.shape[len(batch_shape):])

    y, hidden_out_stack = _stacked_rnn_layers(
        x, hidden_stack, w_in_all, w_h_all, w_out_all, b_all)
    # hidden_out_stack already has the torch.stack(...).transpose(1, 0)
    # layout: (N, depth, L, D).

    y = y.reshape(batch_shape + y.shape[1:])
    hidden_out_stack = hidden_out_stack.reshape(
        batch_shape + hidden_out_stack.shape[1:])

    if no_len:
        y = jnp.squeeze(y, axis=1)
        hidden_out_stack = jnp.squeeze(hidden_out_stack, axis=2)
    if no_batch:
        y = jnp.squeeze(y, axis=0)
        hidden_out_stack = jnp.squeeze(hidden_out_stack, axis=0)
    return y, hidden_out_stack


def make_layer_params(key, depth, dim):
    params = []
    scale = 1.0 / jnp.sqrt(jnp.float32(dim))
    for _ in range(depth):
        k1, k2, k3, k4, key = jax.random.split(key, 5)
        w_in = jax.random.normal(k1, (dim, dim), jnp.float32) * scale
        w_h = jax.random.normal(k2, (dim, dim), jnp.float32) * scale
        w_out = jax.random.normal(k3, (dim, dim), jnp.float32) * scale
        b = jax.random.normal(k4, (1, dim), jnp.float32) * 0.01
        params.append((w_in, w_h, w_out, b))
    return params


if __name__ == "__main__":
    B, L, D, DEPTH = 2, 8, 32, 3

    key = jax.random.PRNGKey(0)
    kx, kh, kp = jax.random.split(key, 3)
    x = jax.random.normal(kx, (B, L, D), jnp.float32)
    hidden_stack = jax.random.normal(kh, (B, DEPTH, D), jnp.float32)
    layer_params = make_layer_params(kp, DEPTH, D)

    fwd = jax.jit(functools.partial(stacked_hidden_state_forward,
                                    layer_params=layer_params))
    y, hidden_out_stack = fwd(x, hidden_stack)
    jax.block_until_ready((y, hidden_out_stack))

    assert y.shape == (B, L, D)
    assert hidden_out_stack.shape == (B, DEPTH, L, D)
    assert bool(jnp.all(jnp.isfinite(y)))
    assert bool(jnp.all(jnp.isfinite(hidden_out_stack)))
    print("KERNEL_OK")
</pallas_src>

<mosaic_0001>
module attributes {stable_mosaic.version = 11 : i64} {
  func.func @_stacked_rnn_kernel(%arg0: i32, %arg1: i32, %arg2: memref<1x8x128xf32, #tpu.memory_space<vmem>>, %arg3: memref<8x8x128xf32, #tpu.memory_space<vmem>>, %arg4: memref<1x128x128xf32, #tpu.memory_space<vmem>>, %arg5: memref<1x128x128xf32, #tpu.memory_space<vmem>>, %arg6: memref<1x128x128xf32, #tpu.memory_space<vmem>>, %arg7: memref<1x1x128xf32, #tpu.memory_space<vmem>>, %arg8: memref<8x8x128xf32, #tpu.memory_space<vmem>>, %arg9: memref<1x8x8x128xf32, #tpu.memory_space<vmem>>, %arg10: memref<8x8x128xf32, #tpu.memory_space<vmem>>, %arg11: memref<3x8x128xf32, #tpu.memory_space<vmem>>) attributes {dimension_semantics = [#tpu.dimension_semantics<arbitrary>, #tpu.dimension_semantics<arbitrary>], iteration_bounds = array<i64: 1, 3>, scalar_prefetch = 0 : i64, scratch_operands = 2 : i64, tpu.core_type = #tpu.core_type<tc>, window_params = [{transform_indices = @transform_0, window_bounds = array<i64: 1, 8, 128>}, {transform_indices = @transform_1, window_bounds = array<i64: 8, 8, 128>}, {transform_indices = @transform_2, window_bounds = array<i64: 1, 128, 128>}, {transform_indices = @transform_3, window_bounds = array<i64: 1, 128, 128>}, {transform_indices = @transform_4, window_bounds = array<i64: 1, 128, 128>}, {transform_indices = @transform_5, window_bounds = array<i64: 1, 1, 128>}, {transform_indices = @transform_6, window_bounds = array<i64: 8, 8, 128>}, {transform_indices = @transform_7, window_bounds = array<i64: 1, 8, 8, 128>}]} {
    %c0 = arith.constant 0 : index
    %c0_0 = arith.constant 0 : index
    %c0_1 = arith.constant 0 : index
    %0 = vector.load %arg4[%c0, %c0_0, %c0_1] : memref<1x128x128xf32, #tpu.memory_space<vmem>>, vector<1x128x128xf32>
    %1 = vector.shape_cast %0 : vector<1x128x128xf32> to vector<128x128xf32>
    %c0_2 = arith.constant 0 : index
    %c0_3 = arith.constant 0 : index
    %c0_4 = arith.constant 0 : index
    %2 = vector.load %arg5[%c0_2, %c0_3, %c0_4] : memref<1x128x128xf32, #tpu.memory_space<vmem>>, vector<1x128x128xf32>
    %3 = vector.shape_cast %2 : vector<1x128x128xf32> to vector<128x128xf32>
    %c0_5 = arith.constant 0 : index
    %c0_6 = arith.constant 0 : index
    %c0_7 = arith.constant 0 : index
    %4 = vector.load %arg6[%c0_5, %c0_6, %c0_7] : memref<1x128x128xf32, #tpu.memory_space<vmem>>, vector<1x128x128xf32>
    %5 = vector.shape_cast %4 : vector<1x128x128xf32> to vector<128x128xf32>
    %c0_8 = arith.constant 0 : index
    %c0_9 = arith.constant 0 : index
    %c0_10 = arith.constant 0 : index
    %6 = vector.load %arg7[%c0_8, %c0_9, %c0_10] : memref<1x1x128xf32, #tpu.memory_space<vmem>>, vector<1x1x128xf32>
    %7 = vector.shape_cast %6 : vector<1x1x128xf32> to vector<1x128xf32>
    %c0_i32 = arith.constant 0 : i32
    %8 = arith.cmpi eq, %arg1, %c0_i32 : i32
    %9 = arith.extui %8 : i1 to i32
    %c0_i32_11 = arith.constant 0 : i32
    %10 = arith.cmpi ne, %9, %c0_i32_11 : i32
    scf.if %10 {
      %c0_82 = arith.constant 0 : index
      %c0_83 = arith.constant 0 : index
      %c0_84 = arith.constant 0 : index
      %120 = vector.load %arg3[%c0_82, %c0_83, %c0_84] : memref<8x8x128xf32, #tpu.memory_space<vmem>>, vector<8x8x128xf32>
      %c0_85 = arith.constant 0 : index
      %c0_86 = arith.constant 0 : index
      %c0_87 = arith.constant 0 : index
      %121 = vector.load %arg8[%c0_85, %c0_86, %c0_87] : memref<8x8x128xf32, #tpu.memory_space<vmem>>, vector<8x8x128xf32>
      tpu.vector_store %arg8[%c0_85, %c0_86, %c0_87], %120 {strides = array<i32>} : memref<8x8x128xf32, #tpu.memory_space<vmem>>, vector<8x8x128xf32>,
    } else {
    }
    %c0_i32_12 = arith.constant 0 : i32
    %11 = arith.cmpi eq, %arg0, %c0_i32_12 : i32
    %12 = arith.extui %11 : i1 to i32
    %c0_i32_13 = arith.constant 0 : i32
    %13 = arith.cmpi ne, %12, %c0_i32_13 : i32
    scf.if %13 {
      %c0_82 = arith.constant 0 : index
      %c0_83 = arith.constant 0 : index
      %c0_84 = arith.constant 0 : index
      %120 = vector.load %arg2[%c0_82, %c0_83, %c0_84] : memref<1x8x128xf32, #tpu.memory_space<vmem>>, vector<1x8x128xf32>
      %121 = vector.shape_cast %120 : vector<1x8x128xf32> to vector<8x128xf32>
      %122 = arith.index_cast %arg1 : i32 to index
      %c0_85 = arith.constant 0 : index
      %c0_86 = arith.constant 0 : index
      %123 = vector.load %arg11[%122, %c0_85, %c0_86] : memref<3x8x128xf32, #tpu.memory_space<vmem>>, vector<1x8x128xf32>
      %124 = vector.shape_cast %123 : vector<1x8x128xf32> to vector<8x128xf32>
      %125 = vector.shape_cast %121 : vector<8x128xf32> to vector<1x8x128xf32>
      tpu.vector_store %arg11[%122, %c0_85, %c0_86], %125 {strides = array<i32>} : memref<3x8x128xf32, #tpu.memory_space<vmem>>, vector<1x8x128xf32>,
    } else {
    }
    %c0_14 = arith.constant 0 : index
    %c0_15 = arith.constant 0 : index
    %c0_16 = arith.constant 0 : index
    %14 = vector.load %arg8[%c0_14, %c0_15, %c0_16] : memref<8x8x128xf32, #tpu.memory_space<vmem>>, vector<8x8x128xf32>
    %15 = vector.shape_cast %14 : vector<8x8x128xf32> to vector<64x128xf32>
    %cst = arith.constant dense<0.000000e+00> : vector<64x128xf32>
    %16 = tpu.matmul %15, %1, %cst {dimension_numbers = #tpu.dot_dimension_numbers<[1], [0], [0], [1], [0, 0, 1, 1], [], []>} : vector<64x128xf32>, vector<128x128xf32>, vector<64x128xf32> -> vector<64x128xf32>
    %17 = vector.broadcast %7 : vector<1x128xf32> to vector<64x128xf32>
    %18 = arith.addf %16, %17 : vector<64x128xf32>
    %19 = vector.shape_cast %18 : vector<64x128xf32> to vector<8x8x128xf32>
    %c0_17 = arith.constant 0 : index
    %c0_18 = arith.constant 0 : index
    %c0_19 = arith.constant 0 : index
    %20 = vector.load %arg10[%c0_17, %c0_18, %c0_19] : memref<8x8x128xf32, #tpu.memory_space<vmem>>, vector<8x8x128xf32>
    tpu.vector_store %arg10[%c0_17, %c0_18, %c0_19], %19 {strides = array<i32>} : memref<8x8x128xf32, #tpu.memory_space<vmem>>, vector<8x8x128xf32>,
    %21 = arith.index_cast %arg1 : i32 to index
    %c0_20 = arith.constant 0 : index
    %c0_21 = arith.constant 0 : index
    %22 = vector.load %arg11[%21, %c0_20, %c0_21] : memref<3x8x128xf32, #tpu.memory_space<vmem>>, vector<1x8x128xf32>
    %23 = vector.shape_cast %22 : vector<1x8x128xf32> to vector<8x128xf32>
    %c0_i32_22 = arith.constant 0 : i32
    %24 = arith.index_cast %c0_i32_22 : i32 to index
    %c0_23 = arith.constant 0 : index
    %c0_24 = arith.constant 0 : index
    %25 = vector.load %arg10[%24, %c0_23, %c0_24] : memref<8x8x128xf32, #tpu.memory_space<vmem>>, vector<1x8x128xf32>
    %26 = vector.shape_cast %25 : vector<1x8x128xf32> to vector<8x128xf32>
    %cst_25 = arith.constant dense<0.000000e+00> : vector<8x128xf32>
    %27 = tpu.matmul %23, %3, %cst_25 {dimension_numbers = #tpu.dot_dimension_numbers<[1], [0], [0], [1], [0, 0, 1, 1], [], []>} : vector<8x128xf32>, vector<128x128xf32>, vector<8x128xf32> -> vector<8x128xf32>
    %28 = arith.addf %26, %27 : vector<8x128xf32>
    %29 = math.tanh %28 : vector<8x128xf32>
    %30 = arith.index_cast %c0_i32_22 : i32 to index
    %c0_26 = arith.constant 0 : index
    %c0_27 = arith.constant 0 : index
    %31 = vector.load %arg10[%30, %c0_26, %c0_27] : memref<8x8x128xf32, #tpu.memory_space<vmem>>, vector<1x8x128xf32>
    %32 = vector.shape_cast %31 : vector<1x8x128xf32> to vector<8x128xf32>
    %33 = vector.shape_cast %29 : vector<8x128xf32> to vector<1x8x128xf32>
    tpu.vector_store %arg10[%30, %c0_26, %c0_27], %33 {strides = array<i32>} : memref<8x8x128xf32, #tpu.memory_space<vmem>>, vector<1x8x128xf32>,
    %c1_i32 = arith.constant 1 : i32
    %34 = arith.index_cast %c1_i32 : i32 to index
    %c0_28 = arith.constant 0 : index
    %c0_29 = arith.constant 0 : index
    %35 = vector.load %arg10[%34, %c0_28, %c0_29] : memref<8x8x128xf32, #tpu.memory_space<vmem>>, vector<1x8x128xf32>
    %36 = vector.shape_cast %35 : vector<1x8x128xf32> to vector<8x128xf32>
    %cst_30 = arith.constant dense<0.000000e+00> : vector<8x128xf32>
    %37 = tpu.matmul %29, %3, %cst_30 {dimension_numbers = #tpu.dot_dimension_numbers<[1], [0], [0], [1], [0, 0, 1, 1], [], []>} : vector<8x128xf32>, vector<128x128xf32>, vector<8x128xf32> -> vector<8x128xf32>
    %38 = arith.addf %36, %37 : vector<8x128xf32>
    %39 = math.tanh %38 : vector<8x128xf32>
    %40 = arith.index_cast %c1_i32 : i32 to index
    %c0_31 = arith.constant 0 : index
    %c0_32 = arith.constant 0 : index
    %41 = vector.load %arg10[%40, %c0_31, %c0_32] : memref<8x8x128xf32, #tpu.memory_space<vmem>>, vector<1x8x128xf32>
    %42 = vector.shape_cast %41 : vector<1x8x128xf32> to vector<8x128xf32>
    %43 = vector.shape_cast %39 : vector<8x128xf32> to vector<1x8x128xf32>
    tpu.vector_store %arg10[%40, %c0_31, %c0_32], %43 {strides = array<i32>} : memref<8x8x128xf32, #tpu.memory_space<vmem>>, vector<1x8x128xf32>,
    %c2_i32 = arith.constant 2 : i32
    %44 = arith.index_cast %c2_i32 : i32 to index
    %c0_33 = arith.constant 0 : index
    %c0_34 = arith.constant 0 : index
    %45 = vector.load %arg10[%44, %c0_33, %c0_34] : memref<8x8x128xf32, #tpu.memory_space<vmem>>, vector<1x8x128xf32>
    %46 = vector.shape_cast %45 : vector<1x8x128xf32> to vector<8x128xf32>
    %cst_35 = arith.constant dense<0.000000e+00> : vector<8x128xf32>
    %47 = tpu.matmul %39, %3, %cst_35 {dimension_numbers = #tpu.dot_dimension_numbers<[1], [0], [0], [1], [0, 0, 1, 1], [], []>} : vector<8x128xf32>, vector<128x128xf32>, vector<8x128xf32> -> vector<8x128xf32>
    %48 = arith.addf %46, %47 : vector<8x128xf32>
    %49 = math.tanh %48 : vector<8x128xf32>
    %50 = arith.index_cast %c2_i32 : i32 to index
    %c0_36 = arith.constant 0 : index
    %c0_37 = arith.constant 0 : index
    %51 = vector.load %arg10[%50, %c0_36, %c0_37] : memref<8x8x128xf32, #tpu.memory_space<vmem>>, vector<1x8x128xf32>
    %52 = vector.shape_cast %51 : vector<1x8x128xf32> to vector<8x128xf32>
    %53 = vector.shape_cast %49 : vector<8x128xf32> to vector<1x8x128xf32>
    tpu.vector_store %arg10[%50, %c0_36, %c0_37], %53 {strides = array<i32>} : memref<8x8x128xf32, #tpu.memory_space<vmem>>, vector<1x8x128xf32>,
    %c3_i32 = arith.constant 3 : i32
    %54 = arith.index_cast %c3_i32 : i32 to index
    %c0_38 = arith.constant 0 : index
    %c0_39 = arith.constant 0 : index
    %55 = vector.load %arg10[%54, %c0_38, %c0_39] : memref<8x8x128xf32, #tpu.memory_space<vmem>>, vector<1x8x128xf32>
    %56 = vector.shape_cast %55 : vector<1x8x128xf32> to vector<8x128xf32>
    %cst_40 = arith.constant dense<0.000000e+00> : vector<8x128xf32>
    %57 = tpu.matmul %49, %3, %cst_40 {dimension_numbers = #tpu.dot_dimension_numbers<[1], [0], [0], [1], [0, 0, 1, 1], [], []>} : vector<8x128xf32>, vector<128x128xf32>, vector<8x128xf32> -> vector<8x128xf32>
    %58 = arith.addf %56, %57 : vector<8x128xf32>
    %59 = math.tanh %58 : vector<8x128xf32>
    %60 = arith.index_cast %c3_i32 : i32 to index
    %c0_41 = arith.constant 0 : index
    %c0_42 = arith.constant 0 : index
    %61 = vector.load %arg10[%60, %c0_41, %c0_42] : memref<8x8x128xf32, #tpu.memory_space<vmem>>, vector<1x8x128xf32>
    %62 = vector.shape_cast %61 : vector<1x8x128xf32> to vector<8x128xf32>
    %63 = vector.shape_cast %59 : vector<8x128xf32> to vector<1x8x128xf32>
    tpu.vector_store %arg10[%60, %c0_41, %c0_42], %63 {strides = array<i32>} : memref<8x8x128xf32, #tpu.memory_space<vmem>>, vector<1x8x128xf32>,
    %c4_i32 = arith.constant 4 : i32
    %64 = arith.index_cast %c4_i32 : i32 to index
    %c0_43 = arith.constant 0 : index
    %c0_44 = arith.constant 0 : index
    %65 = vector.load %arg10[%64, %c0_43, %c0_44] : memref<8x8x128xf32, #tpu.memory_space<vmem>>, vector<1x8x128xf32>
    %66 = vector.shape_cast %65 : vector<1x8x128xf32> to vector<8x128xf32>
    %cst_45 = arith.constant dense<0.000000e+00> : vector<8x128xf32>
    %67 = tpu.matmul %59, %3, %cst_45 {dimension_numbers = #tpu.dot_dimension_numbers<[1], [0], [0], [1], [0, 0, 1, 1], [], []>} : vector<8x128xf32>, vector<128x128xf32>, vector<8x128xf32> -> vector<8x128xf32>
    %68 = arith.addf %66, %67 : vector<8x128xf32>
    %69 = math.tanh %68 : vector<8x128xf32>
    %70 = arith.index_cast %c4_i32 : i32 to index
    %c0_46 = arith.constant 0 : index
    %c0_47 = arith.constant 0 : index
    %71 = vector.load %arg10[%70, %c0_46, %c0_47] : memref<8x8x128xf32, #tpu.memory_space<vmem>>, vector<1x8x128xf32>
    %72 = vector.shape_cast %71 : vector<1x8x128xf32> to vector<8x128xf32>
    %73 = vector.shape_cast %69 : vector<8x128xf32> to vector<1x8x128xf32>
    tpu.vector_store %arg10[%70, %c0_46, %c0_47], %73 {strides = array<i32>} : memref<8x8x128xf32, #tpu.memory_space<vmem>>, vector<1x8x128xf32>,
    %c5_i32 = arith.constant 5 : i32
    %74 = arith.index_cast %c5_i32 : i32 to index
    %c0_48 = arith.constant 0 : index
    %c0_49 = arith.constant 0 : index
    %75 = vector.load %arg10[%74, %c0_48, %c0_49] : memref<8x8x128xf32, #tpu.memory_space<vmem>>, vector<1x8x128xf32>
    %76 = vector.shape_cast %75 : vector<1x8x128xf32> to vector<8x128xf32>
    %cst_50 = arith.constant dense<0.000000e+00> : vector<8x128xf32>
    %77 = tpu.matmul %69, %3, %cst_50 {dimension_numbers = #tpu.dot_dimension_numbers<[1], [0], [0], [1], [0, 0, 1, 1], [], []>} : vector<8x128xf32>, vector<128x128xf32>, vector<8x128xf32> -> vector<8x128xf32>
    %78 = arith.addf %76, %77 : vector<8x128xf32>
    %79 = math.tanh %78 : vector<8x128xf32>
    %80 = arith.index_cast %c5_i32 : i32 to index
    %c0_51 = arith.constant 0 : index
    %c0_52 = arith.constant 0 : index
    %81 = vector.load %arg10[%80, %c0_51, %c0_52] : memref<8x8x128xf32, #tpu.memory_space<vmem>>, vector<1x8x128xf32>
    %82 = vector.shape_cast %81 : vector<1x8x128xf32> to vector<8x128xf32>
    %83 = vector.shape_cast %79 : vector<8x128xf32> to vector<1x8x128xf32>
    tpu.vector_store %arg10[%80, %c0_51, %c0_52], %83 {strides = array<i32>} : memref<8x8x128xf32, #tpu.memory_space<vmem>>, vector<1x8x128xf32>,
    %c6_i32 = arith.constant 6 : i32
    %84 = arith.index_cast %c6_i32 : i32 to index
    %c0_53 = arith.constant 0 : index
    %c0_54 = arith.constant 0 : index
    %85 = vector.load %arg10[%84, %c0_53, %c0_54] : memref<8x8x128xf32, #tpu.memory_space<vmem>>, vector<1x8x128xf32>
    %86 = vector.shape_cast %85 : vector<1x8x128xf32> to vector<8x128xf32>
    %cst_55 = arith.constant dense<0.000000e+00> : vector<8x128xf32>
    %87 = tpu.matmul %79, %3, %cst_55 {dimension_numbers = #tpu.dot_dimension_numbers<[1], [0], [0], [1], [0, 0, 1, 1], [], []>} : vector<8x128xf32>, vector<128x128xf32>, vector<8x128xf32> -> vector<8x128xf32>
    %88 = arith.addf %86, %87 : vector<8x128xf32>
    %89 = math.tanh %88 : vector<8x128xf32>
    %90 = arith.index_cast %c6_i32 : i32 to index
    %c0_56 = arith.constant 0 : index
    %c0_57 = arith.constant 0 : index
    %91 = vector.load %arg10[%90, %c0_56, %c0_57] : memref<8x8x128xf32, #tpu.memory_space<vmem>>, vector<1x8x128xf32>
    %92 = vector.shape_cast %91 : vector<1x8x128xf32> to vector<8x128xf32>
    %93 = vector.shape_cast %89 : vector<8x128xf32> to vector<1x8x128xf32>
    tpu.vector_store %arg10[%90, %c0_56, %c0_57], %93 {strides = array<i32>} : memref<8x8x128xf32, #tpu.memory_space<vmem>>, vector<1x8x128xf32>,
    %c7_i32 = arith.constant 7 : i32
    %94 = arith.index_cast %c7_i32 : i32 to index
    %c0_58 = arith.constant 0 : index
    %c0_59 = arith.constant 0 : index
    %95 = vector.load %arg10[%94, %c0_58, %c0_59] : memref<8x8x128xf32, #tpu.memory_space<vmem>>, vector<1x8x128xf32>
    %96 = vector.shape_cast %95 : vector<1x8x128xf32> to vector<8x128xf32>
    %cst_60 = arith.constant dense<0.000000e+00> : vector<8x128xf32>
    %97 = tpu.matmul %89, %3, %cst_60 {dimension_numbers = #tpu.dot_dimension_numbers<[1], [0], [0], [1], [0, 0, 1, 1], [], []>} : vector<8x128xf32>, vector<128x128xf32>, vector<8x128xf32> -> vector<8x128xf32>
    %98 = arith.addf %96, %97 : vector<8x128xf32>
    %99 = math.tanh %98 : vector<8x128xf32>
    %100 = arith.index_cast %c7_i32 : i32 to index
    %c0_61 = arith.constant 0 : index
    %c0_62 = arith.constant 0 : index
    %101 = vector.load %arg10[%100, %c0_61, %c0_62] : memref<8x8x128xf32, #tpu.memory_space<vmem>>, vector<1x8x128xf32>
    %102 = vector.shape_cast %101 : vector<1x8x128xf32> to vector<8x128xf32>
    %103 = vector.shape_cast %99 : vector<8x128xf32> to vector<1x8x128xf32>
    tpu.vector_store %arg10[%100, %c0_61, %c0_62], %103 {strides = array<i32>} : memref<8x8x128xf32, #tpu.memory_space<vmem>>, vector<1x8x128xf32>,
    %c8_i32 = arith.constant 8 : i32
    %104 = arith.index_cast %arg1 : i32 to index
    %c0_63 = arith.constant 0 : index
    %c0_64 = arith.constant 0 : index
    %105 = vector.load %arg11[%104, %c0_63, %c0_64] : memref<3x8x128xf32, #tpu.memory_space<vmem>>, vector<1x8x128xf32>
    %106 = vector.shape_cast %105 : vector<1x8x128xf32> to vector<8x128xf32>
    %107 = vector.shape_cast %99 : vector<8x128xf32> to vector<1x8x128xf32>
    tpu.vector_store %arg11[%104, %c0_63, %c0_64], %107 {strides = array<i32>} : memref<3x8x128xf32, #tpu.memory_space<vmem>>, vector<1x8x128xf32>,
    %c0_65 = arith.constant 0 : index
    %c0_66 = arith.constant 0 : index
    %c0_67 = arith.constant 0 : index
    %108 = vector.load %arg10[%c0_65, %c0_66, %c0_67] : memref<8x8x128xf32, #tpu.memory_space<vmem>>, vector<8x8x128xf32>
    %c0_68 = arith.constant 0 : index
    %c0_69 = arith.constant 0 : index
    %c0_70 = arith.constant 0 : index
    %c0_71 = arith.constant 0 : index
    %109 = vector.load %arg9[%c0_68, %c0_69, %c0_70, %c0_71] : memref<1x8x8x128xf32, #tpu.memory_space<vmem>>, vector<1x8x8x128xf32>
    %110 = vector.shape_cast %109 : vector<1x8x8x128xf32> to vector<8x8x128xf32>
    %111 = vector.shape_cast %108 : vector<8x8x128xf32> to vector<1x8x8x128xf32>
    tpu.vector_store %arg9[%c0_68, %c0_69, %c0_70, %c0_71], %111 {strides = array<i32>} : memref<1x8x8x128xf32, #tpu.memory_space<vmem>>, vector<1x8x8x128xf32>,
    %c0_72 = arith.constant 0 : index
    %c0_73 = arith.constant 0 : index
    %c0_74 = arith.constant 0 : index
    %112 = vector.load %arg10[%c0_72, %c0_73, %c0_74] : memref<8x8x128xf32, #tpu.memory_space<vmem>>, vector<8x8x128xf32>
    %113 = vector.shape_cast %112 : vector<8x8x128xf32> to vector<64x128xf32>
    %cst_75 = arith.constant dense<0.000000e+00> : vector<64x128xf32>
    %114 = tpu.matmul %113, %5, %cst_75 {dimension_numbers = #tpu.dot_dimension_numbers<[1], [0], [0], [1], [0, 0, 1, 1], [], []>} : vector<64x128xf32>, vector<128x128xf32>, vector<64x128xf32> -> vector<64x128xf32>
    %c0_76 = arith.constant 0 : index
    %c0_77 = arith.constant 0 : index
    %c0_78 = arith.constant 0 : index
    %115 = vector.load %arg8[%c0_76, %c0_77, %c0_78] : memref<8x8x128xf32, #tpu.memory_space<vmem>>, vector<8x8x128xf32>
    %116 = vector.shape_cast %115 : vector<8x8x128xf32> to vector<64x128xf32>
    %117 = arith.addf %114, %116 : vector<64x128xf32>
    %118 = vector.shape_cast %117 : vector<64x128xf32> to vector<8x8x128xf32>
    %c0_79 = arith.constant 0 : index
    %c0_80 = arith.constant 0 : index
    %c0_81 = arith.constant 0 : index
    %119 = vector.load %arg8[%c0_79, %c0_80, %c0_81] : memref<8x8x128xf32, #tpu.memory_space<vmem>>, vector<8x8x128xf32>
    tpu.vector_store %arg8[%c0_79, %c0_80, %c0_81], %118 {strides = array<i32>} : memref<8x8x128xf32, #tpu.memory_space<vmem>>, vector<8x8x128xf32>,
    return
  }
  func.func @transform_0(%arg0: i32, %arg1: i32) -> (i32, i32, i32) {
    %c0_i32 = arith.constant 0 : i32
    %c0_i32_0 = arith.constant 0 : i32
    %c0_i32_1 = arith.constant 0 : i32
    return %arg1, %c0_i32, %c0_i32_0 : i32, i32, i32
  }
  func.func @transform_1(%arg0: i32, %arg1: i32) -> (i32, i32, i32) {
    %c0_i32 = arith.constant 0 : i32
    %c0_i32_0 = arith.constant 0 : i32
    %c0_i32_1 = arith.constant 0 : i32
    return %arg0, %c0_i32, %c0_i32_0 : i32, i32, i32
  }
  func.func @transform_2(%arg0: i32, %arg1: i32) -> (i32, i32, i32) {
    %c0_i32 = arith.constant 0 : i32
    %c0_i32_0 = arith.constant 0 : i32
    %c0_i32_1 = arith.constant 0 : i32
    return %arg1, %c0_i32, %c0_i32_0 : i32, i32, i32
  }
  func.func @transform_3(%arg0: i32, %arg1: i32) -> (i32, i32, i32) {
    %c0_i32 = arith.constant 0 : i32
    %c0_i32_0 = arith.constant 0 : i32
    %c0_i32_1 = arith.constant 0 : i32
    return %arg1, %c0_i32, %c0_i32_0 : i32, i32, i32
  }
  func.func @transform_4(%arg0: i32, %arg1: i32) -> (i32, i32, i32) {
    %c0_i32 = arith.constant 0 : i32
    %c0_i32_0 = arith.constant 0 : i32
    %c0_i32_1 = arith.constant 0 : i32
    return %arg1, %c0_i32, %c0_i32_0 : i32, i32, i32
  }
  func.func @transform_5(%arg0: i32, %arg1: i32) -> (i32, i32, i32) {
    %c0_i32 = arith.constant 0 : i32
    %c0_i32_0 = arith.constant 0 : i32
    %c0_i32_1 = arith.constant 0 : i32
    return %arg1, %c0_i32, %c0_i32_0 : i32, i32, i32
  }
  func.func @transform_6(%arg0: i32, %arg1: i32) -> (i32, i32, i32) {
    %c0_i32 = arith.constant 0 : i32
    %c0_i32_0 = arith.constant 0 : i32
    %c0_i32_1 = arith.constant 0 : i32
    return %arg0, %c0_i32, %c0_i32_0 : i32, i32, i32
  }
  func.func @transform_7(%arg0: i32, %arg1: i32) -> (i32, i32, i32, i32) {
    %c0_i32 = arith.constant 0 : i32
    %c0_i32_0 = arith.constant 0 : i32
    %c0_i32_1 = arith.constant 0 : i32
    return %arg1, %arg0, %c0_i32, %c0_i32_0 : i32, i32, i32, i32
  }
}

</mosaic_0001>

<bundles_post_ra>
// kernel: stacked_hidden_state_forward.1
= control target key start
LH: loop header
LB: loop body
LE: loop exit
PB: predicated region body
PF: predicated region fallthrough
CT: control target
= control target key end

     0   :  { %s3480_s0 = inlined_call_operand.vmem [shape: f32[3,8,128], index: 0, kind: input, shape index: {}]   ;;  %s3481_s1 = inlined_call_operand.vmem [shape: f32[8,8,128], index: 1, kind: input, shape index: {}]   ;;  %s3482_s2 = inlined_call_operand.hbm [shape: f32[3,128,128], index: 2, kind: input, shape index: {}]   ;;  %s3483_s3 = inlined_call_operand.hbm [shape: f32[3,128,128], index: 3, kind: input, shape index: {}]   ;;  %s3484_s4 = inlined_call_operand.hbm [shape: f32[3,128,128], index: 4, kind: input, shape index: {}]   ;;  %s3485_s5 = inlined_call_operand.vmem [shape: f32[3,1,128], index: 5, kind: input, shape index: {}]   ;;  %s3486_s6 = inlined_call_operand.vmem [shape: f32[8,8,128], index: 6, kind: output, shape index: {0}]   ;;  %s3487_s7 = inlined_call_operand.vmem [shape: f32[3,8,8,128], index: 7, kind: output, shape index: {1}]  }
   0x1   :  { %3496 = sst [smem:[#allocation12_spill]] %s3482_s2 }
   0x2   :  { %3497 = sst [smem:[#allocation13_spill]] %s3483_s3 }
   0x3   :  { %13 = vsyncpa [#allocation5], 0 }
   0x4   :  { %15 = vsyncpa [#allocation5 + $0x1], 0 }
   0x5   :  { %16 = vsyncpa [#allocation7], 0 }
   0x6   :  { %18 = vsyncpa [#allocation7 + $0x1], 0  ;;  %s2745_s24 = smov 0   ;;  %s2747_s25 = smov 0  }
   0x7   :  { %s2749_s26 = smov 0   ;;  %s2751_s27 = smov 0  }
   0x8   :  { %s2753_s28 = smov 0   ;;  %s2755_s29 = smov 0  }
   0x9 LB: > { %s3488_s30 = sadd.s32 4294967295, %s2695_s29   ;;  %s33_s8 = sadd.s32 1, %s2691_s28  ;;  %s2695_s29 = sphi %s2755_s29, %s24_s29   ;;  %s2691_s28 = sphi %s2753_s28, %s3517_s28   ;;  %s2687_s27 = sphi %s2751_s27, %s3516_s27   ;;  %s2683_s26 = sphi %s2749_s26, %s3515_s26   ;;  %s2679_s25 = sphi %s2747_s25, %s3514_s25   ;;  %s2675_s24 = sphi %s2745_s24, %s3513_s24  }
   0xa   : > { %p34_p0 = scmp.ge.s32.totalorder %s33_s8, 3  ;;  %s95_s9 = sadd.s32 1, %s2683_s26 }
   0xb   : > { %p102_p1 = scmp.ne.s32.totalorder %s2683_s26, %s2679_s25  ;;  %p103_p2 = scmp.eq.s32.totalorder %s2695_s29, 0 }
   0xc   : > { %s3519_s8 = smov (%p34_p0, %s33_s8), 0  ;;  %p108_p4 = scmp.ne.s32.totalorder %s2679_s25, %s2675_s24 }
   0xd   : > { %3498 = sst [smem:[#allocation11_spill]] %s3519_s8  ;;  %p104_p3 = por %p103_p2, %p102_p1 }
   0xe   : > { %s92_s10 = ssub.s32 %s2691_s28, %s3519_s8  ;;  %p109_p5 = scmp.eq.s32.totalorder %s3488_s30, 0 }
   0xf   : > { %p93_p6 = scmp.eq.s32.totalorder %s92_s10, 0  ;;  %p2481_p8 = scmp.lt.s32.totalorder %s2695_s29, 3 }
  0x10   : > { %p2786_p7 = por %p109_p5, %p108_p4  ;;  %s3490_s13 = sand.u32 1, %s2683_s26  }
  0x11   : > { %s2792_s12 = scalar_select %p93_p6, %s2683_s26, %s95_s9  }
  0x12   : > { %s3499_s11 = scalar_select %p2786_p7, 1, 0 }
  0x13   : > { %s2796_s14 = sshll.u32 %s2691_s28, 11  ;;  %s2800_s15 = sshll.u32 %s3490_s13, 7 }
  0x14   : > { %p2802_p9 = pnand %p2481_p8, %p104_p3  ;;  %s301_s17 = sand.u32 1, %s2695_s29  }
  0x15   : > { %s3501_s3 = sld [smem:[#allocation13_spill]]  ;;  %s305_s21 = scalar_lea.vmem [#allocation6], %s2800_s15 }
  0x16   : > { %s312_s22 = sshll.u32 %s305_s21, 4  ;;  %s2817_s23 = scalar_lea.sflag [#allocation7], %s301_s17  ;;  %s2814_s22 = int_to_ptr.vmem [resolvable:$true] %s312_s22 }
  0x17   : > { %p2823_p12 = pneg %p2802_p9 }
  0x1b   : > { %s2811_s20 = scalar_lea.hbm %s3501_s3, %s2796_s14  ;;  %s2556_s19 = scalar_lea.hbm %s3501_s3, 6144 }
  0x1c   : > { %s2551_s24 = scalar_lea.hbm %s2811_s20, 2048  ;;  %p2557_p1 = scmp.lt.u32.totalorder %s2811_s20, %s3501_s3 }
  0x1d   : > { %p2552_p11 = scmp.ne.s32.totalorder %s2811_s20, %s2551_s24  ;;  %p2558_p2 = scmp.lt.u32.totalorder %s2556_s19, %s2551_s24 }
  0x1e   : > { %p2560_p4 = scmp.lt.u32.totalorder %s2551_s24, %s2811_s20 }
  0x1f   : > { %p2554_p13 = pnand %p2823_p12, %p2552_p11  ;;  %p2559_p3 = por %p2558_p2, %p2557_p1 }
  0x21   : > { %p2555_p0 = pneg %p2554_p13  ;;  %p2561_p5 = por %p2560_p4, %p2559_p3 }
  0x23   : > { %p2562_p6 = pnand %p2561_p5, %p2555_p0 }
  0x25   : > { %2565 = shalt.err (!%p2562_p6)
}
  0x26   : > { %s2566_s17 = scalar_lea.vmem %s2814_s22, 2048  ;;  %s2697_s10 = smov [#allocation6]  }
  0x27   : > { %p2567_p8 = scmp.ne.s32.totalorder %s2814_s22, %s2566_s17  ;;  %s2571_s18 = sshll.u32 %s2697_s10, 4  ;;  %s2572_s18 = int_to_ptr.vmem [resolvable:$false] %s2571_s18 }
  0x28   : > { %s2573_s30 = scalar_lea.vmem %s2572_s18, 4096  ;;  %p2574_p10 = scmp.lt.s32.totalorder %s2814_s22, %s2572_s18 }
  0x29   : > { %p2569_p11 = pnand %p2567_p8, %p2823_p12  ;;  %p2575_p7 = scmp.lt.s32.totalorder %s2573_s30, %s2566_s17 }
  0x2b   : > { %p2570_p13 = pneg %p2569_p11  ;;  %p2576_p1 = por %p2575_p7, %p2574_p10 }
  0x2d   : > { %p2577_p2 = pnand %p2576_p1, %p2570_p13 }
  0x2f   : > { %2580 = shalt.err (!%p2577_p2)
}
  0x30   : > { %s3491_s24 = smov 128   ;;  %s3493_s19 = smov 8  }
  0x31   : > { %2477 = dma.hbm_to_vmem [thread:$0]  (!%p2802_p9), %s2811_s20, 2048, %s2814_s22, %s2817_s23, %s3491_s24, %s3491_s24, %s3493_s19  }
  0x32   : > { %p347_p7 = scmp.lt.s32.totalorder %s2695_s29, 4  ;;  %p3503_p10 = scmp.ge.s32.totalorder %s2695_s29, 1 }
  0x33   : > { %s3505_s2 = sld [smem:[#allocation12_spill]]  ;;  %s284_s30 = scalar_lea.vmem [#allocation4], %s2800_s15 }
  0x34   : > { %p2853_p0 = pnand %p3503_p10, %p347_p7  ;;  %s291_s13 = sshll.u32 %s284_s30, 4  ;;  %s2864_s13 = int_to_ptr.vmem [resolvable:$true] %s291_s13 }
  0x35   : > { %s3506_s20 = sand.u32 1, %s2683_s26  }
  0x36   : > { %s3504_s21 = scalar_select %p2853_p0, 1, 0 }
  0x37   : > { %s2868_s22 = scalar_lea.sflag [#allocation5], %s3506_s20 }
  0x39   : > { %s2861_s18 = scalar_lea.hbm %s3505_s2, %s2796_s14  ;;  %s2586_s10 = scalar_lea.hbm %s3505_s2, 6144 }
  0x3a   : > { %s2581_s24 = scalar_lea.hbm %s2861_s18, 2048  ;;  %p2587_p6 = scmp.lt.u32.totalorder %s2861_s18, %s3505_s2 }
  0x3b   : > { %p2582_p3 = scmp.ne.s32.totalorder %s2861_s18, %s2581_s24  ;;  %p2588_p8 = scmp.lt.u32.totalorder %s2586_s10, %s2581_s24 }
  0x3c   : > { %p2590_p13 = scmp.lt.u32.totalorder %s2581_s24, %s2861_s18 }
  0x3d   : > { %p2584_p4 = pnand %p2582_p3, %p2823_p12  ;;  %p2589_p11 = por %p2588_p8, %p2587_p6 }
  0x3f   : > { %p2585_p5 = pneg %p2584_p4  ;;  %p2591_p1 = por %p2590_p13, %p2589_p11 }
  0x41   : > { %p2592_p2 = pnand %p2591_p1, %p2585_p5 }
  0x43   : > { %2595 = shalt.err (!%p2592_p2)
}
  0x44   : > { %s2596_s30 = scalar_lea.vmem %s2864_s13, 2048  ;;  %s2700_s19 = smov [#allocation4]  }
  0x45   : > { %p2597_p7 = scmp.ne.s32.totalorder %s2864_s13, %s2596_s30  ;;  %s2601_s20 = sshll.u32 %s2700_s19, 4  ;;  %s2602_s20 = int_to_ptr.vmem [resolvable:$false] %s2601_s20 }
  0x46   : > { %s2603_s3 = scalar_lea.vmem %s2602_s20, 4096  ;;  %p2604_p4 = scmp.lt.s32.totalorder %s2864_s13, %s2602_s20 }
  0x47   : > { %p2599_p10 = pnand %p2597_p7, %p2823_p12  ;;  %p2605_p0 = scmp.lt.s32.totalorder %s2603_s3, %s2596_s30 }
  0x49   : > { %p2600_p3 = pneg %p2599_p10  ;;  %p2606_p6 = por %p2605_p0, %p2604_p4 }
  0x4b   : > { %p2607_p8 = pnand %p2606_p6, %p2600_p3 }
  0x4d   : > { %2610 = shalt.err (!%p2607_p8)
}
  0x4e   : > { %s3507_s8 = smov 8   ;;  %s3508_s24 = smov 128  }
  0x4f   : > { %2474 = dma.hbm_to_vmem [thread:$0]  (!%p2802_p9), %s2861_s18, 2048, %s2864_s13, %s2868_s22, %s3508_s24, %s3508_s24, %s3507_s8  }
  0x50   : > { %s2899_s19 = scalar_lea.hbm %s3484_s4, %s2796_s14  ;;  %s326_s30 = scalar_lea.vmem [#allocation8], %s2800_s15 }
  0x51   : > { %s333_s20 = sshll.u32 %s326_s30, 4  ;;  %s2611_s3 = scalar_lea.hbm %s2899_s19, 2048  ;;  %s2902_s20 = int_to_ptr.vmem [resolvable:$true] %s333_s20 }
  0x52   : > { %p2612_p0 = scmp.ne.s32.totalorder %s2899_s19, %s2611_s3  ;;  %s2616_s18 = scalar_lea.hbm %s3484_s4, 6144 }
  0x53   : > { %p2617_p13 = scmp.lt.u32.totalorder %s2899_s19, %s3484_s4  ;;  %p2618_p1 = scmp.lt.u32.totalorder %s2616_s18, %s2611_s3 }
  0x54   : > { %p2614_p5 = pnand %p2612_p0, %p2823_p12  ;;  %p2620_p7 = scmp.lt.u32.totalorder %s2611_s3, %s2899_s19 }
  0x55   : > { %p2619_p2 = por %p2618_p1, %p2617_p13 }
  0x56   : > { %p2615_p11 = pneg %p2614_p5 }
  0x57   : > { %p2621_p10 = por %p2620_p7, %p2619_p2 }
  0x59   : > { %p2622_p3 = pnand %p2621_p10, %p2615_p11 }
  0x5b   : > { %2625 = shalt.err (!%p2622_p3)
}
  0x5c   : > { %s2626_s15 = scalar_lea.vmem %s2902_s20, 2048  ;;  %s2701_s2 = smov [#allocation8]  }
  0x5d   : > { %p2627_p4 = scmp.ne.s32.totalorder %s2902_s20, %s2626_s15  ;;  %s2631_s17 = sshll.u32 %s2701_s2, 4  ;;  %s2632_s17 = int_to_ptr.vmem [resolvable:$false] %s2631_s17 }
  0x5e   : > { %s2633_s10 = scalar_lea.vmem %s2632_s17, 4096  ;;  %p2634_p0 = scmp.lt.s32.totalorder %s2902_s20, %s2632_s17 }
  0x5f   : > { %p2629_p6 = pnand %p2627_p4, %p2823_p12  ;;  %p2635_p5 = scmp.lt.s32.totalorder %s2633_s10, %s2626_s15 }
  0x61   : > { %p2630_p8 = pneg %p2629_p6  ;;  %p2636_p13 = por %p2635_p5, %p2634_p0 }
  0x63   : > { %p2637_p1 = pnand %p2636_p13, %p2630_p8 }
  0x65   : > { %2640 = shalt.err (!%p2637_p1)
}
  0x66   : > { %2480 = dma.hbm_to_vmem [thread:$0]  (!%p2802_p9), %s2899_s19, 2048, %s2902_s20, %s2817_s23, %s3508_s24, %s3508_s24, %s3507_s8  }
  0x67   : > { %p3509_p12 = scmp.ne.s32.totalorder %s3504_s21, 0 }
  0x68   : > { %s353_s9 = sand.u32 (!%p3509_p12), 1, %s2679_s25   ;;  %p3510_p11 = scmp.ne.s32.totalorder (!%p3509_p12), %s3499_s11, 0 }
  0x69   : > { %351 = sbr.rel (%p3509_p12) target bundleno = 2191 (0x88f), region = 44  ;;  %s2932_s30 = sshll.u32 (!%p3509_p12), %s353_s9, 7 }
  0x6a   : > { %s354_s3 = scalar_lea.sflag (!%p3509_p12), [#allocation5], %s353_s9  ;;  %s357_s13 = scalar_lea.vmem (!%p3509_p12), [#allocation4], %s2932_s30 }
  0x70   : > { %2666 = dma.done.wait (%p3510_p11), %s354_s3, 2048  }
  0x71   : > { %2668 = vsyncadd (%p3510_p11), %s354_s3, 4294965248  ;;  %s3511_s16 = sadd.s32 4294967295, %s2695_s29   ;;  %s2942_s8 = scalar_lea.vmem [#allocation6], %s2932_s30 }
  0x72   : > { %s362_s23 = sand.u32 1, %s3511_s16  }
  0x73   : > { %s363_s21 = scalar_lea.sflag [#allocation7], %s362_s23 }
  0x74   : > { %2670 = dma.done.wait (%p3510_p11), %s363_s21, 4096  }
  0x75   : > { %2672 = vsyncadd (%p3510_p11), %s363_s21, 4294963200  ;;  %p437_p9 = scmp.lt.s32.totalorder %s2687_s27, 2  ;;  %v2968_v0 = vld [vmem:[%s357_s13] sm:$0xff]  ;;  %v2970_v1 = vld [vmem:[%s357_s13 + $0x8] sm:$0xff]  ;;  %s375_s3 = scalar_lea.vmem [#allocation8], %s2932_s30 }
  0x76   : > { %v2972_v2 = vld [vmem:[%s357_s13 + $0x10] sm:$0xff]  ;;  %v2974_v3 = vld [vmem:[%s357_s13 + $0x18] sm:$0xff]  ;;  %v2976_v4 = vld [vmem:[%s357_s13 + $0x20] sm:$0xff]  ;;  %p1645_p2 = scmp.ne.s32.totalorder %s2687_s27, 0 }
  0x77   : > { %s2950_s24 = scalar_select %p437_p9, %s2687_s27, 2  ;;  %v2978_v5 = vld [vmem:[%s357_s13 + $0x28] sm:$0xff]  ;;  %v2980_v6 = vld [vmem:[%s357_s13 + $0x30] sm:$0xff]  ;;  %v2982_v7 = vld [vmem:[%s357_s13 + $0x38] sm:$0xff] }
  0x78   : > { %v2984_v8 = vld [vmem:[%s357_s13 + $0x40] sm:$0xff]  ;;  %v2986_v9 = vld [vmem:[%s357_s13 + $0x48] sm:$0xff]  ;;  %v2988_v10 = vld [vmem:[%s357_s13 + $0x50] sm:$0xff] }
  0x79   : > { %s1642_s19 = sshll.u32 %s2950_s24, 3  ;;  %s449_s22 = scalar_lea.vmem %s3485_s5, %s2950_s24  ;;  %v2990_v11 = vld [vmem:[%s357_s13 + $0x58] sm:$0xff]  ;;  %v2992_v12 = vld [vmem:[%s357_s13 + $0x60] sm:$0xff]  ;;  %v2994_v13 = vld [vmem:[%s357_s13 + $0x68] sm:$0xff] }
  0x7a   : > { %s2960_s2 = scalar_lea.vmem %s3480_s0, %s1642_s19  ;;  %s1656_s11 = sshll.u32 %s2950_s24, 6  ;;  %v2996_v14 = vld [vmem:[%s357_s13 + $0x70] sm:$0xff]  ;;  %v2998_v15 = vld [vmem:[%s357_s13 + $0x78] sm:$0xff]  ;;  %v482_v16 = vld [vmem:[%s2942_s8] sm:$0xff] }
  0x7b   : > { %s2966_s9 = scalar_lea.vmem %s3487_s7, %s1656_s11  ;;  %v483_v17 = vld [vmem:[%s2942_s8 + $0x8] sm:$0xff]  ;;  %v484_v18 = vld [vmem:[%s2942_s8 + $0x10] sm:$0xff]  ;;  %v485_v19 = vld [vmem:[%s2942_s8 + $0x18] sm:$0xff] }
  0x7c   : > { %v3005_v20 = vld [vmem:[%s2942_s8 + $0x20] sm:$0xff]  ;;  %v3008_v21 = vld [vmem:[%s2942_s8 + $0x28] sm:$0xff]  ;;  %v3011_v22 = vld [vmem:[%s2942_s8 + $0x30] sm:$0xff] }
  0x7d   : > { %v3014_v23 = vld [vmem:[%s2942_s8 + $0x38] sm:$0xff]  ;;  %v3017_v24 = vld [vmem:[%s2942_s8 + $0x40] sm:$0xff]  ;;  %v3020_v25 = vld [vmem:[%s2942_s8 + $0x48] sm:$0xff] }
  0x7e   : > { %v3023_v26 = vld [vmem:[%s2942_s8 + $0x50] sm:$0xff]  ;;  %v3026_v27 = vld [vmem:[%s2942_s8 + $0x58] sm:$0xff]  ;;  %v3029_v28 = vld [vmem:[%s2942_s8 + $0x60] sm:$0xff] }
  0x7f   : > { %v3032_v29 = vld [vmem:[%s2942_s8 + $0x68] sm:$0xff]  ;;  %v3035_v30 = vld [vmem:[%s2942_s8 + $0x70] sm:$0xff]  ;;  %v3038_v31 = vld [vmem:[%s2942_s8 + $0x78] sm:$0xff]  ;;  %518 = sbr.rel (%p1645_p2) target bundleno = 138 (0x8a), region = 60 }
  0x80   : > { %v3041_v32 = vld [vmem:[%s375_s3] sm:$0xff]  ;;  %v3043_v33 = vld [vmem:[%s375_s3 + $0x8] sm:$0xff]  ;;  %v3045_v34 = vld [vmem:[%s375_s3 + $0x10] sm:$0xff] }
  0x81   : > { %v3047_v35 = vld [vmem:[%s375_s3 + $0x18] sm:$0xff]  ;;  %v3049_v36 = vld [vmem:[%s375_s3 + $0x20] sm:$0xff]  ;;  %v3051_v37 = vld [vmem:[%s375_s3 + $0x28] sm:$0xff] }
  0x82   : > { %v3053_v38 = vld [vmem:[%s375_s3 + $0x30] sm:$0xff]  ;;  %v3055_v39 = vld [vmem:[%s375_s3 + $0x38] sm:$0xff]  ;;  %v3057_v40 = vld [vmem:[%s375_s3 + $0x40] sm:$0xff] }
  0x83   : > { %v3059_v41 = vld [vmem:[%s375_s3 + $0x48] sm:$0xff]  ;;  %v3061_v42 = vld [vmem:[%s375_s3 + $0x50] sm:$0xff]  ;;  %v3063_v43 = vld [vmem:[%s375_s3 + $0x58] sm:$0xff] }
  0x84   : > { %v3065_v44 = vld [vmem:[%s375_s3 + $0x60] sm:$0xff]  ;;  %v3067_v45 = vld [vmem:[%s375_s3 + $0x68] sm:$0xff]  ;;  %v3069_v46 = vld [vmem:[%s375_s3 + $0x70] sm:$0xff] }
  0x85   : > { %v3071_v47 = vld [vmem:[%s375_s3 + $0x78] sm:$0xff]  ;;  %v519_v48 = vld [vmem:[%s3481_s1] sm:$0xff] (!%p1645_p2)  ;;  %v520_v49 = vld [vmem:[%s3481_s1 + $0x8] sm:$0xff] (!%p1645_p2) }
  0x86   : > { %v521_v50 = vld [vmem:[%s3481_s1 + $0x10] sm:$0xff]  ;;  %527 = vst [vmem:[%s3486_s6] sm:$0xff] %v519_v48  ;;  %528 = vst [vmem:[%s3486_s6 + $0x8] sm:$0xff] %v520_v49  ;;  %v522_v51 = vld [vmem:[%s3481_s1 + $0x18] sm:$0xff] }
  0x87   : > { %529 = vst [vmem:[%s3486_s6 + $0x10] sm:$0xff] %v521_v50  ;;  %v523_v52 = vld [vmem:[%s3481_s1 + $0x20] sm:$0xff]  ;;  %v524_v53 = vld [vmem:[%s3481_s1 + $0x28] sm:$0xff]  ;;  %530 = vst [vmem:[%s3486_s6 + $0x18] sm:$0xff] %v522_v51 }
  0x88   : > { %531 = vst [vmem:[%s3486_s6 + $0x20] sm:$0xff] %v523_v52  ;;  %532 = vst [vmem:[%s3486_s6 + $0x28] sm:$0xff] %v524_v53  ;;  %v525_v54 = vld [vmem:[%s3481_s1 + $0x30] sm:$0xff]  ;;  %v526_v55 = vld [vmem:[%s3481_s1 + $0x38] sm:$0xff] }
  0x89   : > { %533 = vst [vmem:[%s3486_s6 + $0x30] sm:$0xff] %v525_v54  ;;  %534 = vst [vmem:[%s3486_s6 + $0x38] sm:$0xff] %v526_v55 }
  0x8a PF: > { %v2209_v56 = vpack.c.bf16 %v2970_v1, %v2968_v0  ;;  %v3124_v57 = vpack.c.bf16 %v483_v17, %v482_v16  ;;  %v2213_v58 = vpack.c.bf16 %v2974_v3, %v2972_v2  ;;  %v2702_v59 = vmov 0.0|0.0  }
  0x8b   : > { %2241 = vmatprep.subr.bf16.mxu1 %v2702_v59  ;;  %v3135_v61 = vpack.c.bf16 %v485_v19, %v484_v18  ;;  %v2217_v62 = vpack.c.bf16 %v2978_v5, %v2976_v4  ;;  %vm2703_vm0 = vmmov 0   ;;  %v2704_v63 = vmov 0.0   ;;  %v3276_v19 = vld [vmem:[%s449_s22] ss:$0 sm:$0xff] }
  0x8c   : > { %2210 = vmatprep.subr.bf16.mxu0 %v2209_v56  ;;  %2243 = vmatpush3.bf16.msra.mxu1 %v3124_v57  ;;  %v3146_v0 = vpack.c.bf16 %v3008_v21, %v3005_v20  ;;  %v2221_v1 = vpack.c.bf16 %v2982_v7, %v2980_v6  ;;  %v3154_v2 = vpack.c.bf16 %v3014_v23, %v3011_v22 }
  0x8d   : > { %2212 = vmatpush3.bf16.msra.mxu0 %v2209_v56  ;;  %2244 = vmatprep.subr.bf16.mxu1 %v2702_v59  ;;  %v2225_v3 = vpack.c.bf16 %v2986_v9, %v2984_v8  ;;  %v3162_v4 = vpack.c.bf16 %v3020_v25, %v3017_v24  ;;  %v2229_v5 = vpack.c.bf16 %v2990_v11, %v2988_v10  ;;  %v539_v11 = vld [vmem:[%s2960_s2] sm:$0xff] }
  0x8e   : > { %2214 = vmatprep.subr.bf16.mxu0 %v2213_v58  ;;  %1917 = vmatprep.mubr.msk.f32.mxu1 %vm2703_vm0, %v2704_v63  ;;  %v3170_v6 = vpack.c.bf16 %v3026_v27, %v3023_v26  ;;  %v2233_v7 = vpack.c.bf16 %v2994_v13, %v2992_v12  ;;  %v3178_v8 = vpack.c.bf16 %v3032_v29, %v3029_v28  ;;  %v3236_v13 = vld [vmem:[%s3486_s6 + $0x10] sm:$0xff] }
  0x8f   : > { %v2237_v9 = vpack.c.bf16 %v2998_v15, %v2996_v14  ;;  %v3186_v10 = vpack.c.bf16 %v3038_v31, %v3035_v30  ;;  %v3242_v14 = vld [vmem:[%s3486_s6 + $0x18] sm:$0xff]  ;;  %v3248_v15 = vld [vmem:[%s3486_s6 + $0x20] sm:$0xff]  ;;  %v3254_v16 = vld [vmem:[%s3486_s6 + $0x28] sm:$0xff] }
  0x90   : > { %2246 = vmatpush3.bf16.msra.mxu1 %v3135_v61  ;;  %v3260_v17 = vld [vmem:[%s3486_s6 + $0x30] sm:$0xff]  ;;  %v3266_v18 = vld [vmem:[%s3486_s6 + $0x38] sm:$0xff] }
  0x91   : > { %v3132_v60 = vld [vmem:[%s3486_s6] sm:$0xff]  ;;  %2216 = vmatpush3.bf16.msra.mxu0 %v2213_v58  ;;  %2247 = vmatprep.subr.bf16.mxu1 %v2702_v59  ;;  %v3194_v12 = vld [vmem:[%s3486_s6 + $0x8] sm:$0xff] }
  0x92   : > { %1873 = vmatprep.mubr.f32.mxu0 %v3132_v60  ;;  %2218 = vmatprep.subr.bf16.mxu0 %v2217_v62 }
  0x94   : > { %2249 = vmatpush3.bf16.msra.mxu1 %v3146_v0 }
  0x95   : > { %2220 = vmatpush3.bf16.msra.mxu0 %v2217_v62  ;;  %2250 = vmatprep.subr.bf16.mxu1 %v2702_v59 }
  0x96   : > { %2222 = vmatprep.subr.bf16.mxu0 %v2221_v1 }
  0x98   : > { %2252 = vmatpush3.bf16.msra.mxu1 %v3154_v2 }
  0x99   : > { %2224 = vmatpush3.bf16.msra.mxu0 %v2221_v1  ;;  %2253 = vmatprep.subr.bf16.mxu1 %v2702_v59 }
  0x9a   : > { %2226 = vmatprep.subr.bf16.mxu0 %v2225_v3 }
  0x9c   : > { %2255 = vmatpush3.bf16.msra.mxu1 %v3162_v4 }
  0x9d   : > { %2228 = vmatpush3.bf16.msra.mxu0 %v2225_v3  ;;  %2256 = vmatprep.subr.bf16.mxu1 %v2702_v59 }
  0x9e   : > { %2230 = vmatprep.subr.bf16.mxu0 %v2229_v5 }
  0xa0   : > { %2258 = vmatpush3.bf16.msra.mxu1 %v3170_v6 }
  0xa1   : > { %2232 = vmatpush3.bf16.msra.mxu0 %v2229_v5  ;;  %2259 = vmatprep.subr.bf16.mxu1 %v2702_v59 }
  0xa2   : > { %2234 = vmatprep.subr.bf16.mxu0 %v2233_v7 }
  0xa4   : > { %2261 = vmatpush3.bf16.msra.mxu1 %v3178_v8 }
  0xa5   : > { %2236 = vmatpush3.bf16.msra.mxu0 %v2233_v7  ;;  %2262 = vmatprep.subr.bf16.mxu1 %v2702_v59 }
  0xa6   : > { %2238 = vmatprep.subr.bf16.mxu0 %v2237_v9 }
  0xa8   : > { %2264 = vmatpush3.bf16.msra.mxu1 %v3186_v10 }
  0xa9   : > { %2240 = vmatpush3.bf16.msra.mxu0 %v2237_v9  ;;  %2289 = vmatprep.subr.bf16.mxu1 %v2702_v59 }
  0xaa   : > { %2265 = vmatprep.subr.bf16.mxu0 %v2702_v59 }
  0xab   : > { %1918 = vmatmul.mubr.f32.vlgmr.msra.gmra.mrb[0].mxu1 %v539_v11 }
  0xac   : > { %1874 = vmatmul.mubr.f32.vlgmr.msra.gmra.mrb[0].mxu0 %v3194_v12  ;;  %2291 = vmatpush3.bf16.msra.mxu1 %v3124_v57 }
  0xad   : > { %2267 = vmatpush3.bf16.msra.mxu0 %v3124_v57  ;;  %2292 = vmatprep.subr.bf16.mxu1 %v2702_v59 }
  0xae   : > { %2268 = vmatprep.subr.bf16.mxu0 %v2702_v59  ;;  %1987 = vmatprep.mubr.msk.f32.mxu1 %vm2703_vm0, %v2704_v63 }
  0xaf   : > { %1876 = vmatprep.mubr.f32.mxu0 %v3236_v13 }
  0xb0   : > { %2294 = vmatpush3.bf16.msra.mxu1 %v3135_v61  ;;  %1877 = vmatmul.mubr.f32.gmra.mrb[2].mxu0 %v3242_v14 }
  0xb1   : > { %2270 = vmatpush3.bf16.msra.mxu0 %v3135_v61  ;;  %2295 = vmatprep.subr.bf16.mxu1 %v2702_v59 }
  0xb2   : > { %2271 = vmatprep.subr.bf16.mxu0 %v2702_v59  ;;  %1879 = vmatprep.mubr.f32.mxu0 %v3248_v15 }
  0xb4   : > { %2297 = vmatpush3.bf16.msra.mxu1 %v3146_v0  ;;  %1880 = vmatmul.mubr.f32.gmra.mrb[4].mxu0 %v3254_v16 }
  0xb5   : > { %2273 = vmatpush3.bf16.msra.mxu0 %v3146_v0  ;;  %2298 = vmatprep.subr.bf16.mxu1 %v2702_v59 }
  0xb6   : > { %2274 = vmatprep.subr.bf16.mxu0 %v2702_v59  ;;  %1882 = vmatprep.mubr.f32.mxu0 %v3260_v17 }
  0xb8   : > { %2300 = vmatpush3.bf16.msra.mxu1 %v3154_v2  ;;  %1883 = vmatmul.mubr.f32.gmra.mrb[6].mxu0 %v3266_v18 }
  0xb9   : > { %2276 = vmatpush3.bf16.msra.mxu0 %v3154_v2  ;;  %2301 = vmatprep.subr.bf16.mxu1 %v2702_v59 }
  0xba   : > { %2277 = vmatprep.subr.bf16.mxu0 %v2702_v59  ;;  %1952 = vmatprep.mubr.msk.f32.mxu0 %vm2703_vm0, %v2704_v63 }
  0xbc   : > { %2303 = vmatpush3.bf16.msra.mxu1 %v3162_v4 }
  0xbd   : > { %2279 = vmatpush3.bf16.msra.mxu0 %v3162_v4  ;;  %2304 = vmatprep.subr.bf16.mxu1 %v2702_v59 }
  0xbe   : > { %2280 = vmatprep.subr.bf16.mxu0 %v2702_v59 }
  0xc0   : > { %2306 = vmatpush3.bf16.msra.mxu1 %v3170_v6 }
  0xc1   : > { %2282 = vmatpush3.bf16.msra.mxu0 %v3170_v6  ;;  %2307 = vmatprep.subr.bf16.mxu1 %v2702_v59 }
  0xc2   : > { %2283 = vmatprep.subr.bf16.mxu0 %v2702_v59 }
  0xc4   : > { %2309 = vmatpush3.bf16.msra.mxu1 %v3178_v8 }
  0xc5   : > { %2285 = vmatpush3.bf16.msra.mxu0 %v3178_v8  ;;  %2310 = vmatprep.subr.bf16.mxu1 %v2702_v59 }
  0xc6   : > { %2286 = vmatprep.subr.bf16.mxu0 %v2702_v59 }
  0xc8   : > { %2312 = vmatpush3.bf16.msra.mxu1 %v3186_v10 }
  0xc9   : > { %2288 = vmatpush3.bf16.msra.mxu0 %v3186_v10  ;;  %2337 = vmatprep.subr.bf16.mxu1 %v2702_v59 }
  0xca   : > { %2313 = vmatprep.subr.bf16.mxu0 %v2702_v59 }
 0x17e   : > { %v740_v20 = vpop.f32.mrb[0].mxu1 }
 0x17f   : > { %v1875_v21 = vpop.f32.mrb[0].mxu0  ;;  %v1919_v22 = vpop.f32.mrb[1].mxu1 }
 0x180   : > { %v623_v23 = vpop.f32.mrb[1].mxu0  ;;  %v629_v49 = vadd.f32 %v1875_v21, %v3276_v19 }
 0x181   : > { %v624_v24 = vadd.f32 %v3276_v19, %v623_v23 }
 0x183   : > { %v744_v25 = vadd.f32 %v740_v20, %v624_v24  ;;  %v1878_v27 = vpop.f32.mrb[2].mxu0 }
 0x184   : > { %v633_v28 = vpop.f32.mrb[3].mxu0  ;;  %v639_v1 = vadd.f32 %v1878_v27, %v3276_v19 }
 0x185   : > { %2535 = vtanh.f32 %v744_v25  ;;  %v634_v54 = vadd.f32 %v3276_v19, %v633_v28 }
 0x187   : > { %v3302_v29 = vpop.f32.mrb[4].mxu0 }
 0x188   : > { %v3304_v30 = vpop.f32.mrb[5].mxu0 }
 0x189   : > { %v644_v11 = vadd.f32 %v3276_v19, %v3304_v30 }
 0x18b   : > { %v3306_v31 = vpop.f32.mrb[6].mxu0 }
 0x18c   : > { %v3308_v48 = vpop.f32.mrb[7].mxu0 }
 0x18f   : > { %v3279_v26 = vpop.eup %2535 }
 0x190   : > { %1281 = vst [vmem:[%s2966_s9] sm:$0xff] %v3279_v26  ;;  %1953 = vmatmul.mubr.f32.vlgmr.msra.gmra.mrb[8].mxu0 %v3279_v26 }
 0x191   : > { %2315 = vmatpush3.bf16.msra.mxu0 %v3124_v57  ;;  %2022 = vmatprep.mubr.msk.f32.mxu0 %vm2703_vm0, %v2704_v63 }
 0x192   : > { %2316 = vmatprep.subr.bf16.mxu0 %v2702_v59 }
 0x195   : > { %2318 = vmatpush3.bf16.msra.mxu0 %v3135_v61 }
 0x196   : > { %2319 = vmatprep.subr.bf16.mxu0 %v2702_v59 }
 0x199   : > { %2321 = vmatpush3.bf16.msra.mxu0 %v3146_v0 }
 0x19a   : > { %2322 = vmatprep.subr.bf16.mxu0 %v2702_v59 }
 0x19d   : > { %2324 = vmatpush3.bf16.msra.mxu0 %v3154_v2 }
 0x19e   : > { %2325 = vmatprep.subr.bf16.mxu0 %v2702_v59 }
 0x1a1   : > { %2327 = vmatpush3.bf16.msra.mxu0 %v3162_v4 }
 0x1a2   : > { %2328 = vmatprep.subr.bf16.mxu0 %v2702_v59 }
 0x1a5   : > { %2330 = vmatpush3.bf16.msra.mxu0 %v3170_v6 }
 0x1a6   : > { %2331 = vmatprep.subr.bf16.mxu0 %v2702_v59 }
 0x1a9   : > { %2333 = vmatpush3.bf16.msra.mxu0 %v3178_v8 }
 0x1aa   : > { %2334 = vmatprep.subr.bf16.mxu0 %v2702_v59 }
 0x1ad   : > { %2336 = vmatpush3.bf16.msra.mxu0 %v3186_v10 }
 0x1ae   : > { %2361 = vmatprep.subr.bf16.mxu0 %v2702_v59 }
 0x263   : > { %v815_v50 = vpop.f32.mrb[8].mxu0 }
 0x264   : > { %v819_v51 = vadd.f32 %v815_v50, %v629_v49  ;;  %v1954_v52 = vpop.f32.mrb[9].mxu0 }
 0x266   : > { %2537 = vtanh.f32 %v819_v51 }
 0x270   : > { %v3311_v53 = vpop.eup %2537 }
 0x271   : > { %1282 = vst [vmem:[%s2966_s9 + $0x8] sm:$0xff] %v3311_v53  ;;  %1988 = vmatmul.mubr.f32.vlgmr.msra.gmra.mrb[2].mxu1 %v3311_v53 }
 0x272   : > { %2339 = vmatpush3.bf16.msra.mxu1 %v3124_v57  ;;  %2057 = vmatprep.mubr.msk.f32.mxu1 %vm2703_vm0, %v2704_v63 }
 0x273   : > { %2340 = vmatprep.subr.bf16.mxu1 %v2702_v59 }
 0x276   : > { %2342 = vmatpush3.bf16.msra.mxu1 %v3135_v61 }
 0x277   : > { %2343 = vmatprep.subr.bf16.mxu1 %v2702_v59 }
 0x27a   : > { %2345 = vmatpush3.bf16.msra.mxu1 %v3146_v0 }
 0x27b   : > { %2346 = vmatprep.subr.bf16.mxu1 %v2702_v59 }
 0x27e   : > { %2348 = vmatpush3.bf16.msra.mxu1 %v3154_v2 }
 0x27f   : > { %2349 = vmatprep.subr.bf16.mxu1 %v2702_v59 }
 0x282   : > { %2351 = vmatpush3.bf16.msra.mxu1 %v3162_v4 }
 0x283   : > { %2352 = vmatprep.subr.bf16.mxu1 %v2702_v59 }
 0x286   : > { %2354 = vmatpush3.bf16.msra.mxu1 %v3170_v6 }
 0x287   : > { %2355 = vmatprep.subr.bf16.mxu1 %v2702_v59 }
 0x28a   : > { %2357 = vmatpush3.bf16.msra.mxu1 %v3178_v8 }
 0x28b   : > { %2358 = vmatprep.subr.bf16.mxu1 %v2702_v59 }
 0x28e   : > { %2360 = vmatpush3.bf16.msra.mxu1 %v3186_v10 }
 0x28f   : > { %2385 = vmatprep.subr.bf16.mxu1 %v2702_v59 }
 0x344   : > { %v890_v55 = vpop.f32.mrb[2].mxu1 }
 0x345   : > { %v894_v56 = vadd.f32 %v890_v55, %v634_v54  ;;  %v1989_v58 = vpop.f32.mrb[3].mxu1 }
 0x347   : > { %2539 = vtanh.f32 %v894_v56 }
 0x351   : > { %v3335_v62 = vpop.eup %2539 }
 0x352   : > { %1283 = vst [vmem:[%s2966_s9 + $0x10] sm:$0xff] %v3335_v62  ;;  %2023 = vmatmul.mubr.f32.vlgmr.msra.gmra.mrb[10].mxu0 %v3335_v62 }
 0x353   : > { %2363 = vmatpush3.bf16.msra.mxu0 %v3124_v57  ;;  %2092 = vmatprep.mubr.msk.f32.mxu0 %vm2703_vm0, %v2704_v63 }
 0x354   : > { %2364 = vmatprep.subr.bf16.mxu0 %v2702_v59 }
 0x357   : > { %2366 = vmatpush3.bf16.msra.mxu0 %v3135_v61 }
 0x358   : > { %2367 = vmatprep.subr.bf16.mxu0 %v2702_v59 }
 0x35b   : > { %2369 = vmatpush3.bf16.msra.mxu0 %v3146_v0 }
 0x35c   : > { %2370 = vmatprep.subr.bf16.mxu0 %v2702_v59 }
 0x35f   : > { %2372 = vmatpush3.bf16.msra.mxu0 %v3154_v2 }
 0x360   : > { %2373 = vmatprep.subr.bf16.mxu0 %v2702_v59 }
 0x363   : > { %2375 = vmatpush3.bf16.msra.mxu0 %v3162_v4 }
 0x364   : > { %2376 = vmatprep.subr.bf16.mxu0 %v2702_v59 }
 0x367   : > { %2378 = vmatpush3.bf16.msra.mxu0 %v3170_v6 }
 0x368   : > { %2379 = vmatprep.subr.bf16.mxu0 %v2702_v59 }
 0x36b   : > { %2381 = vmatpush3.bf16.msra.mxu0 %v3178_v8 }
 0x36c   : > { %2382 = vmatprep.subr.bf16.mxu0 %v2702_v59 }
 0x36f   : > { %2384 = vmatpush3.bf16.msra.mxu0 %v3186_v10 }
 0x370   : > { %2409 = vmatprep.subr.bf16.mxu0 %v2702_v59 }
 0x425   : > { %v965_v3 = vpop.f32.mrb[10].mxu0 }
 0x426   : > { %v969_v5 = vadd.f32 %v965_v3, %v639_v1  ;;  %v2024_v7 = vpop.f32.mrb[11].mxu0 }
 0x428   : > { %2541 = vtanh.f32 %v969_v5 }
 0x432   : > { %v3359_v9 = vpop.eup %2541 }
 0x433   : > { %1284 = vst [vmem:[%s2966_s9 + $0x18] sm:$0xff] %v3359_v9  ;;  %2058 = vmatmul.mubr.f32.vlgmr.msra.gmra.mrb[4].mxu1 %v3359_v9 }
 0x434   : > { %2387 = vmatpush3.bf16.msra.mxu1 %v3124_v57  ;;  %2127 = vmatprep.mubr.msk.f32.mxu1 %vm2703_vm0, %v2704_v63 }
 0x435   : > { %2388 = vmatprep.subr.bf16.mxu1 %v2702_v59 }
 0x438   : > { %2390 = vmatpush3.bf16.msra.mxu1 %v3135_v61 }
 0x439   : > { %2391 = vmatprep.subr.bf16.mxu1 %v2702_v59 }
 0x43c   : > { %2393 = vmatpush3.bf16.msra.mxu1 %v3146_v0 }
 0x43d   : > { %2394 = vmatprep.subr.bf16.mxu1 %v2702_v59 }
 0x440   : > { %2396 = vmatpush3.bf16.msra.mxu1 %v3154_v2 }
 0x441   : > { %2397 = vmatprep.subr.bf16.mxu1 %v2702_v59 }
 0x444   : > { %2399 = vmatpush3.bf16.msra.mxu1 %v3162_v4 }
 0x445   : > { %2400 = vmatprep.subr.bf16.mxu1 %v2702_v59 }
 0x448   : > { %2402 = vmatpush3.bf16.msra.mxu1 %v3170_v6 }
 0x449   : > { %2403 = vmatprep.subr.bf16.mxu1 %v2702_v59 }
 0x44c   : > { %2405 = vmatpush3.bf16.msra.mxu1 %v3178_v8 }
 0x44d   : > { %2406 = vmatprep.subr.bf16.mxu1 %v2702_v59 }
 0x450   : > { %2408 = vmatpush3.bf16.msra.mxu1 %v3186_v10 }
 0x506   : > { %v1040_v20 = vpop.f32.mrb[4].mxu1 }
 0x507   : > { %v1044_v21 = vadd.f32 %v1040_v20, %v644_v11  ;;  %v2059_v22 = vpop.f32.mrb[5].mxu1 }
 0x509   : > { %2543 = vtanh.f32 %v1044_v21 }
 0x513   : > { %v2544_v23 = vpop.eup %2543 }
 0x514   : > { %1285 = vst [vmem:[%s2966_s9 + $0x20] sm:$0xff] %v2544_v23  ;;  %2093 = vmatmul.mubr.f32.vlgmr.msra.gmra.mrb[12].mxu0 %v2544_v23 }
 0x515   : > { %2411 = vmatpush3.bf16.msra.mxu0 %v3124_v57  ;;  %2162 = vmatprep.mubr.msk.f32.mxu0 %vm2703_vm0, %v2704_v63  ;;  %v2433_v57 = vpack.c.bf16 %v3043_v33, %v3041_v32  ;;  %v2441_v32 = vpack.c.bf16 %v3051_v37, %v3049_v36  ;;  %v2445_v33 = vpack.c.bf16 %v3055_v39, %v3053_v38 }
 0x516   : > { %2412 = vmatprep.subr.bf16.mxu0 %v2702_v59  ;;  %v2457_v36 = vpack.c.bf16 %v3067_v45, %v3065_v44  ;;  %v2461_v37 = vpack.c.bf16 %v3071_v47, %v3069_v46  ;;  %v654_v38 = vadd.f32 %v3276_v19, %v3308_v48 }
 0x517   : > { %2434 = vmatprep.subr.bf16.mxu1 %v2433_v57 }
 0x519   : > { %2414 = vmatpush3.bf16.msra.mxu0 %v3135_v61  ;;  %v649_v61 = vadd.f32 %v3302_v29, %v3276_v19 }
 0x51a   : > { %2415 = vmatprep.subr.bf16.mxu0 %v2702_v59 }
 0x51d   : > { %2417 = vmatpush3.bf16.msra.mxu0 %v3146_v0 }
 0x51e   : > { %2418 = vmatprep.subr.bf16.mxu0 %v2702_v59 }
 0x521   : > { %2420 = vmatpush3.bf16.msra.mxu0 %v3154_v2 }
 0x522   : > { %2421 = vmatprep.subr.bf16.mxu0 %v2702_v59 }
 0x525   : > { %2423 = vmatpush3.bf16.msra.mxu0 %v3162_v4  ;;  %v2437_v4 = vpack.c.bf16 %v3047_v35, %v3045_v34  ;;  %v2449_v34 = vpack.c.bf16 %v3059_v41, %v3057_v40  ;;  %v2453_v35 = vpack.c.bf16 %v3063_v43, %v3061_v42 }
 0x526   : > { %2424 = vmatprep.subr.bf16.mxu0 %v2702_v59 }
 0x529   : > { %2426 = vmatpush3.bf16.msra.mxu0 %v3170_v6 }
 0x52a   : > { %2427 = vmatprep.subr.bf16.mxu0 %v2702_v59 }
 0x52d   : > { %2429 = vmatpush3.bf16.msra.mxu0 %v3178_v8 }
 0x52e   : > { %2430 = vmatprep.subr.bf16.mxu0 %v2702_v59 }
 0x531   : > { %2432 = vmatpush3.bf16.msra.mxu0 %v3186_v10 }
 0x5e7   : > { %v1115_v63 = vpop.f32.mrb[12].mxu0 }
 0x5e8   : > { %v1119_v0 = vadd.f32 %v1115_v63, %v649_v61  ;;  %v2094_v2 = vpop.f32.mrb[13].mxu0 }
 0x5ea   : > { %2545 = vtanh.f32 %v1119_v0 }
 0x5f4   : > { %v2546_v6 = vpop.eup %2545 }
 0x5f5   : > { %1286 = vst [vmem:[%s2966_s9 + $0x28] sm:$0xff] %v2546_v6  ;;  %2128 = vmatmul.mubr.f32.vlgmr.msra.gmra.mrb[6].mxu1 %v2546_v6 }
 0x5f6   : > { %2436 = vmatpush3.bf16.msra.mxu1 %v2433_v57  ;;  %2197 = vmatprep.mubr.f32.mxu1 %v3279_v26 }
 0x5f7   : > { %2438 = vmatprep.subr.bf16.mxu1 %v2437_v4 }
 0x5fa   : > { %2440 = vmatpush3.bf16.msra.mxu1 %v2437_v4 }
 0x5fb   : > { %2442 = vmatprep.subr.bf16.mxu1 %v2441_v32 }
 0x5fe   : > { %2444 = vmatpush3.bf16.msra.mxu1 %v2441_v32 }
 0x5ff   : > { %2446 = vmatprep.subr.bf16.mxu1 %v2445_v33 }
 0x602   : > { %2448 = vmatpush3.bf16.msra.mxu1 %v2445_v33 }
 0x603   : > { %2450 = vmatprep.subr.bf16.mxu1 %v2449_v34 }
 0x606   : > { %2452 = vmatpush3.bf16.msra.mxu1 %v2449_v34 }
 0x607   : > { %2454 = vmatprep.subr.bf16.mxu1 %v2453_v35 }
 0x60a   : > { %2456 = vmatpush3.bf16.msra.mxu1 %v2453_v35 }
 0x60b   : > { %2458 = vmatprep.subr.bf16.mxu1 %v2457_v36 }
 0x60e   : > { %2460 = vmatpush3.bf16.msra.mxu1 %v2457_v36 }
 0x60f   : > { %2462 = vmatprep.subr.bf16.mxu1 %v2461_v37 }
 0x612   : > { %2464 = vmatpush3.bf16.msra.mxu1 %v2461_v37 }
 0x615   : > { %2198 = vmatmul.mubr.f32.vlgmr.msra.gmra.mrb[8].mxu1 %v3311_v53 }
 0x616   : > { %2200 = vmatprep.mubr.f32.mxu1 %v3335_v62 }
 0x619   : > { %2201 = vmatmul.mubr.f32.gmra.mrb[10].mxu1 %v3359_v9 }
 0x61a   : > { %2203 = vmatprep.mubr.f32.mxu1 %v2544_v23 }
 0x61d   : > { %2204 = vmatmul.mubr.f32.gmra.mrb[12].mxu1 %v2546_v6 }
 0x6c8   : > { %v1190_v39 = vpop.f32.mrb[6].mxu1 }
 0x6c9   : > { %v1194_v40 = vadd.f32 %v1190_v39, %v654_v38  ;;  %v2129_v41 = vpop.f32.mrb[7].mxu1 }
 0x6cb   : > { %2547 = vtanh.f32 %v1194_v40 }
 0x6d5   : > { %v2548_v42 = vpop.eup %2547 }
 0x6d6   : > { %1287 = vst [vmem:[%s2966_s9 + $0x30] sm:$0xff] %v2548_v42  ;;  %2163 = vmatmul.mubr.f32.vlgmr.msra.gmra.mrb[14].mxu0 %v2548_v42  ;;  %2206 = vmatprep.mubr.f32.mxu1 %v2548_v42 }
 0x6e8   : > { %v2199_v43 = vpop.f32.mrb[8].mxu1 }
 0x6e9   : > { %v1377_v44 = vadd.f32 %v2199_v43, %v3194_v12  ;;  %v1371_v45 = vpop.f32.mrb[9].mxu1 }
 0x6ea   : > { %v1372_v46 = vadd.f32 %v1371_v45, %v3132_v60 }
 0x6eb   : > { %1411 = vst [vmem:[%s3486_s6 + $0x8] sm:$0xff] %v1377_v44 }
 0x6ec   : > { %1410 = vst [vmem:[%s3486_s6] sm:$0xff] %v1372_v46  ;;  %v2202_v47 = vpop.f32.mrb[10].mxu1 }
 0x6ed   : > { %v1387_v59 = vadd.f32 %v2202_v47, %v3242_v14  ;;  %v1381_v8 = vpop.f32.mrb[11].mxu1 }
 0x6ee   : > { %v1382_v10 = vadd.f32 %v1381_v8, %v3236_v13  ;;  %v659_v13 = vadd.f32 %v3306_v31, %v3276_v19 }
 0x6ef   : > { %1413 = vst [vmem:[%s3486_s6 + $0x18] sm:$0xff] %v1387_v59 }
 0x6f0   : > { %1412 = vst [vmem:[%s3486_s6 + $0x10] sm:$0xff] %v1382_v10  ;;  %v2205_v60 = vpop.f32.mrb[12].mxu1 }
 0x6f1   : > { %v1397_v12 = vadd.f32 %v2205_v60, %v3254_v16  ;;  %v1391_v24 = vpop.f32.mrb[13].mxu1 }
 0x6f2   : > { %v1392_v25 = vadd.f32 %v1391_v24, %v3248_v15 }
 0x6f3   : > { %1415 = vst [vmem:[%s3486_s6 + $0x28] sm:$0xff] %v1397_v12 }
 0x6f4   : > { %1414 = vst [vmem:[%s3486_s6 + $0x20] sm:$0xff] %v1392_v25 }
 0x7a9   : > { %v1265_v14 = vpop.f32.mrb[14].mxu0 }
 0x7aa   : > { %v1269_v26 = vadd.f32 %v1265_v14, %v659_v13  ;;  %v2164_v27 = vpop.f32.mrb[15].mxu0 }
 0x7ac   : > { %2549 = vtanh.f32 %v1269_v26 }
 0x7b6   : > { %v2550_v28 = vpop.eup %2549 }
 0x7b7   : > { %1288 = vst [vmem:[%s2966_s9 + $0x38] sm:$0xff] %v2550_v28  ;;  %2207 = vmatmul.mubr.f32.gmra.mrb[14].mxu1 %v2550_v28 }
 0x88a   : > { %v2208_v16 = vpop.f32.mrb[14].mxu1 }
 0x88b   : > { %v1407_v15 = vadd.f32 %v2208_v16, %v3266_v18  ;;  %v1401_v29 = vpop.f32.mrb[15].mxu1 }
 0x88c   : > { %v1402_v30 = vadd.f32 %v1401_v29, %v3260_v17 }
 0x88d   : > { %1417 = vst [vmem:[%s3486_s6 + $0x38] sm:$0xff] %v1407_v15 }
 0x88e   : > { %1416 = vst [vmem:[%s3486_s6 + $0x30] sm:$0xff] %v1402_v30 }
 0x88f PF: > { %s24_s29 = sadd.s32 1, %s2695_s29   ;;  %s3512_s9 = sld [smem:[#allocation11_spill]] }
 0x890   : > { %p21_p7 = scmp.ge.s32.totalorder %s24_s29, 5   ;;  %s3513_s24 = smov %s2679_s25 }
 0x891   : > { %s3514_s25 = smov %s2683_s26  ;;  %s3515_s26 = smov %s2792_s12 }
 0x892   : > { %s3516_s27 = smov %s2691_s28  ;;  %23 = sbr.rel (!%p21_p7) target bundleno = 9 (0x9), region = 146 }
 0x895   : > { %s3517_s28 = smov %s3512_s9 }
 0x899   :  { %1465 = vsyncpa [#allocation5], 1 }
 0x89a   :  { %1467 = vsyncpa [#allocation5 + $0x1], 1 }
 0x89b   :  { %1468 = vsyncpa [#allocation7], 1 }
 0x89c   :  { %1470 = vsyncpa [#allocation7 + $0x1], 1 }

</bundles_post_ra>
